<compile_context>
chip_gen: v7x
topology: tpu7x:2x2x1
jax: 0.10.0
libtpu: 0.0.40
codegen_flags: <defaults>
</compile_context>

<pallas_src>
import numpy as np

import jax
import jax.numpy as jnp
from jax.experimental import pallas as pl
from jax.experimental.pallas import tpu as pltpu


# 3x3 tap enumeration shared by weight packing, mask packing and the kernel.
_TAPS = tuple((ki, kj) for ki in (-1, 0, 1) for kj in (-1, 0, 1))
_OFF_TAPS = tuple(t for t in _TAPS if t != (0, 0))
_MASK_ROW = {t: i for i, t in enumerate(_OFF_TAPS)}


# ---------------------------------------------------------------------------
# One-time probe: confirm pltpu.roll follows np.roll's shift direction.
# Cheap insurance for the tap-shift sign; runs eagerly once (cached).
# ---------------------------------------------------------------------------
_ROLL_IS_NUMPY_CONVENTION = None


def _roll_matches_numpy():
    global _ROLL_IS_NUMPY_CONVENTION
    if _ROLL_IS_NUMPY_CONVENTION is None:
        def probe(x_ref, o_ref):
            o_ref[...] = pltpu.roll(x_ref[...], 1, axis=1)

        x = jnp.arange(8 * 128, dtype=jnp.float32).reshape(8, 128)
        y = pl.pallas_call(
            probe, out_shape=jax.ShapeDtypeStruct((8, 128), jnp.float32))(x)
        # np.roll(row, 1)[0] == row[-1]
        _ROLL_IS_NUMPY_CONVENTION = (float(y[0, 0]) == float(x[0, -1]))
    return _ROLL_IS_NUMPY_CONVENTION


# ---------------------------------------------------------------------------
# Kernel factory
# ---------------------------------------------------------------------------
def _make_bottleneck_kernel(num_cells, has_state, B, C, H, W, out_dtype):
    """Process B images, each (C, H*W), through `num_cells` CRNN cells."""
    HW = H * W
    # shifted[p] must equal x[p + off]  ->  np.roll(x, -off).
    sgn = -1 if _roll_matches_numpy() else 1

    def kernel(*refs):
        idx = 0
        x_ref = refs[idx]; idx += 1                       # (B, C, HW)
        h_refs = ()
        if has_state:
            h_refs = refs[idx:idx + num_cells]            # each (B, C, HW)
            idx += num_cells
        w_ref = refs[idx]; idx += 1                       # (nc, 9, C, Cin)
        b_ref = refs[idx]; idx += 1                       # (nc, C, 1)
        m_ref = refs[idx]; idx += 1                       # (8, 1, HW) f32 masks
        out_refs = refs[idx:idx + num_cells]              # each (B, C, HW)

        for b in range(B):
            cur = x_ref[b]                                # (C, HW) f32
            for ci in range(num_cells):
                if has_state:
                    # Stack x and h_prev once -> one matmul per tap covers
                    # both convolutions (Cin = 2C == 8 sublanes at C=4).
                    src = jnp.concatenate([cur, h_refs[ci][b]], axis=0)
                else:
                    src = cur
                acc = None
                for t, (ki, kj) in enumerate(_TAPS):
                    off = ki * W + kj
                    if off == 0:
                        shifted = src
                    else:
                        shifted = pltpu.roll(src, (sgn * off) % HW, axis=1)
                        # zero the row/column wrap-around (and cross-image
                        # wrap, since each b is handled separately)
                        shifted = shifted * m_ref[_MASK_ROW[(ki, kj)]]
                    part = jnp.dot(w_ref[ci, t], shifted,
                                   preferred_element_type=jnp.float32)
                    acc = part if acc is None else acc + part
                cur = jnp.tanh(acc + b_ref[ci]).astype(out_dtype)  # (C, HW)
                out_refs[ci][b] = cur

    return kernel


# ---------------------------------------------------------------------------
# Wrapper / launch
# ---------------------------------------------------------------------------
def _pick_batch_block(N, per_image_bytes, num_image_arrays,
                      vmem_budget_bytes=16 * 1024 * 1024):
    """Largest B dividing N such that (a) >= 2 grid steps remain when N >= 2
    (feeds both v7x TensorCores) and (b) the double-buffered per-step image
    footprint stays under a conservative budget (fits v5e/v6e/v7x)."""
    if N <= 1:
        return 1
    best = 1
    for b in range(1, N + 1):
        if N % b:
            continue
        if N // b < 2:
            continue
        if 2 * num_image_arrays * b * per_image_bytes > vmem_budget_bytes:
            continue
        best = b
    return best


def _run_cells(x_flat, h_prevs, w_all, b_all, masks, H, W):
    """Run all CRNN cells in a single pallas_call.  x_flat: (N, C, H*W)."""
    N, C, HW = x_flat.shape
    num_cells = w_all.shape[0]
    has_state = h_prevs is not None

    num_image_arrays = 1 + num_cells + (num_cells if has_state else 0)
    B = _pick_batch_block(N, C * HW * x_flat.dtype.itemsize, num_image_arrays)
    grid = (N // B,)

    kernel = _make_bottleneck_kernel(num_cells, has_state, B, C, H, W,
                                     x_flat.dtype)

    img_spec = pl.BlockSpec((B, C, HW), lambda n: (n, 0, 0))
    in_specs = [img_spec]
    args = [x_flat]
    if has_state:
        for h in h_prevs:
            in_specs.append(pl.BlockSpec((B, C, HW), lambda n: (n, 0, 0)))
            args.append(h)
    # Tiny weights / biases / edge masks: whole arrays, grid-invariant.
    in_specs.append(pl.BlockSpec(w_all.shape, lambda n: (0, 0, 0, 0)))
    args.append(w_all)
    in_specs.append(pl.BlockSpec(b_all.shape, lambda n: (0, 0, 0)))
    args.append(b_all)
    in_specs.append(pl.BlockSpec(masks.shape, lambda n: (0, 0, 0)))
    args.append(masks)

    out_specs = tuple(pl.BlockSpec((B, C, HW), lambda n: (n, 0, 0))
                      for _ in range(num_cells))
    out_shape = tuple(jax.ShapeDtypeStruct((N, C, HW), x_flat.dtype)
                      for _ in range(num_cells))

    states = pl.pallas_call(
        kernel,
        out_shape=out_shape,
        grid=grid,
        in_specs=in_specs,
        out_specs=out_specs,
        compiler_params=pltpu.CompilerParams(
            dimension_semantics=("parallel",)),
    )(*args)
    return list(states)


@jax.jit
def _forward_no_state(x_nchw, w_all, b_all, masks):
    N, C, H, W = x_nchw.shape
    x = x_nchw.reshape(N, C, H * W)               # free trailing-dim collapse
    states = _run_cells(x, None, w_all, b_all, masks, H, W)
    return states, states[-1].reshape(N, C, H, W)


@jax.jit
def _forward_with_state(x_nchw, h_prevs, w_all, b_all, masks):
    N, C, H, W = x_nchw.shape
    x = x_nchw.reshape(N, C, H * W)
    states = _run_cells(x, h_prevs, w_all, b_all, masks, H, W)
    return states, states[-1].reshape(N, C, H, W)


# ---------------------------------------------------------------------------
# Module port
# ---------------------------------------------------------------------------
def _build_tap_masks(H, W):
    """(8, 1, H*W) f32 validity masks for the 8 off-center 3x3 taps."""
    pos = np.arange(H * W)
    hh, ww = pos // W, pos % W
    rows = []
    for (ki, kj) in _OFF_TAPS:
        valid = ((hh + ki >= 0) & (hh + ki < H) &
                 (ww + kj >= 0) & (ww + kj < W))
        rows.append(valid.astype(np.float32))
    return jnp.asarray(np.stack(rows)[:, None, :])


class BottleneckPallas:
    """Pallas port of refine_net.Bottleneck (CRNN config).

    RNN states are stored / consumed in flattened-NCHW (N, C, H*W) layout in
    output_dict (internal convention: avoids any relayout at the kernel edge).
    """

    def __init__(self, tensor_shape, num_cells=2, seed=42):
        c, h, w = tensor_shape
        self.in_shape = tensor_shape
        self.out_shape = tensor_shape
        self.num_cells = num_cells
        self.spatial = (h, w)
        _roll_matches_numpy()                      # eager probe (cached)

        key = jax.random.PRNGKey(seed)
        self.params = []
        w_x_all, w_xh_all, b_all = [], [], []
        for _ in range(num_cells):
            key, k1, k2, k3, k4 = jax.random.split(key, 5)
            wx = 0.1 * jax.random.normal(k1, (3, 3, c, c), jnp.float32)  # HWIO
            wh = 0.1 * jax.random.normal(k2, (3, 3, c, c), jnp.float32)
            bx = 0.1 * jax.random.normal(k3, (c,), jnp.float32)
            bh = 0.1 * jax.random.normal(k4, (c,), jnp.float32)
            self.params.append(dict(wx=wx, wh=wh, bx=bx, bh=bh))
            # Per-tap matmul weights (C_out, C_in); tap order matches _TAPS.
            tx = jnp.stack([wx[ki + 1, kj + 1].T for (ki, kj) in _TAPS])  # (9,c,c)
            th = jnp.stack([wh[ki + 1, kj + 1].T for (ki, kj) in _TAPS])  # (9,c,c)
            w_x_all.append(tx)                                            # x-only
            w_xh_all.append(jnp.concatenate([tx, th], axis=-1))           # x || h
            # Fused bias (bx + bh): correct for cold start too (conv(0,Wh)==0).
            b_all.append((bx + bh).reshape(c, 1))
        self.w_x_all = jnp.stack(w_x_all)      # (nc, 9, c, c)
        self.w_xh_all = jnp.stack(w_xh_all)    # (nc, 9, c, 2c)
        self.b_all = jnp.stack(b_all)          # (nc, c, 1)
        self.tap_masks = _build_tap_masks(h, w)  # (8, 1, h*w)

    def forward(self, bottleneck_features_nchw, output_dict,
                previous_output_dict=None):
        if previous_output_dict is None:
            # Cold start: hidden states are zero -> skip h taps & Wh entirely.
            states, out = _forward_no_state(
                bottleneck_features_nchw, self.w_x_all, self.b_all,
                self.tap_masks)
        else:
            h_prevs = [previous_output_dict['refinenet_rnn_states_%d' % i]
                       for i in range(self.num_cells)]
            states, out = _forward_with_state(
                bottleneck_features_nchw, h_prevs, self.w_xh_all, self.b_all,
                self.tap_masks)
        for i, s in enumerate(states):
            output_dict['refinenet_rnn_states_%d' % i] = s   # (N, C, H*W)
        return out


# ---------------------------------------------------------------------------
# Pure-JAX reference
# ---------------------------------------------------------------------------
def _conv3x3_ref(x_nhwc, w_hwio):
    return jax.lax.conv_general_dilated(
        x_nhwc, w_hwio, window_strides=(1, 1), padding='SAME',
        dimension_numbers=('NHWC', 'HWIO', 'NHWC'),
        precision=jax.lax.Precision.HIGHEST)


def _bottleneck_ref(module, x_nchw, prev_states_flat=None):
    N, C, H, W = x_nchw.shape
    x = jnp.transpose(x_nchw, (0, 2, 3, 1))
    states = []
    for i, p in enumerate(module.params):
        if prev_states_flat is not None:
            h_prev = jnp.transpose(prev_states_flat[i].reshape(N, C, H, W),
                                   (0, 2, 3, 1))
        else:
            h_prev = jnp.zeros_like(x)
        x = jnp.tanh(_conv3x3_ref(x, p['wx']) + p['bx']
                     + _conv3x3_ref(h_prev, p['wh']) + p['bh'])
        states.append(x)
    return jnp.transpose(x, (0, 3, 1, 2)), states


if __name__ == "__main__":
    N, C, H, W = 2, 4, 16, 16
    key = jax.random.PRNGKey(0)
    kx1, kx2 = jax.random.split(key)
    x1 = jax.random.normal(kx1, (N, C, H, W), jnp.float32)
    x2 = jax.random.normal(kx2, (N, C, H, W), jnp.float32)

    module = BottleneckPallas(tensor_shape=(C, H, W), num_cells=2)

    # Step 1: cold start (no previous states) -> x-only kernel path.
    out_dict_0 = {}
    y1 = jax.block_until_ready(module.forward(x1, out_dict_0, None))
    ref_y1, ref_states_1 = _bottleneck_ref(module, x1, None)
    assert y1.shape == (N, C, H, W)
    assert jnp.allclose(y1, ref_y1, atol=1e-4, rtol=1e-4), "step-1 mismatch"
    for i in range(2):
        k = 'refinenet_rnn_states_%d' % i
        assert k in out_dict_0
        ref_state = jnp.transpose(ref_states_1[i],
                                  (0, 3, 1, 2)).reshape(N, C, H * W)
        assert jnp.allclose(out_dict_0[k], ref_state,
                            atol=1e-4, rtol=1e-4), "state mismatch %d" % i

    # Step 2: recurrent step feeding previous states back -> x||h kernel path.
    out_dict_1 = {}
    y2 = jax.block_until_ready(module.forward(x2, out_dict_1, out_dict_0))
    ref_y2, _ = _bottleneck_ref(
        module, x2, [out_dict_0['refinenet_rnn_states_0'],
                     out_dict_0['refinenet_rnn_states_1']])
    assert jnp.allclose(y2, ref_y2, atol=1e-4, rtol=1e-4), "step-2 mismatch"

    print("KERNEL_OK")
</pallas_src>

<mosaic_0001>
module attributes {stable_mosaic.version = 11 : i64} {
  func.func @probe(%arg0: memref<8x128xf32, #tpu.memory_space<vmem>>, %arg1: memref<8x128xf32, #tpu.memory_space<vmem>>) attributes {dimension_semantics = [], scalar_prefetch = 0 : i64, scratch_operands = 0 : i64, tpu.core_type = #tpu.core_type<tc>} {
    %c0 = arith.constant 0 : index
    %c0_0 = arith.constant 0 : index
    %0 = vector.load %arg0[%c0, %c0_0] : memref<8x128xf32, #tpu.memory_space<vmem>>, vector<8x128xf32>
    %c1_i32 = arith.constant 1 : i32
    %1 = tpu.dynamic_rotate %0 by %c1_i32 dim 1 : vector<8x128xf32>, i32 -> vector<8x128xf32>
    %c0_1 = arith.constant 0 : index
    %c0_2 = arith.constant 0 : index
    %2 = vector.load %arg1[%c0_1, %c0_2] : memref<8x128xf32, #tpu.memory_space<vmem>>, vector<8x128xf32>
    tpu.vector_store %arg1[%c0_1, %c0_2], %1 {strides = array<i32>} : memref<8x128xf32, #tpu.memory_space<vmem>>, vector<8x128xf32>,
    return
  }
}

</mosaic_0001>

<bundles_post_ra>
// kernel: tpu_custom_call.1
= control target key start
LH: loop header
LB: loop body
LE: loop exit
PB: predicated region body
PF: predicated region fallthrough
CT: control target
= control target key end

     0   :  { %6 = vsyncpa [#allocation3], 0  ;;  %s128_s0 = inlined_call_operand.hbm [shape: f32[8,128], index: 0, kind: input, shape index: {}]   ;;  %s129_s1 = inlined_call_operand.hbm [shape: f32[8,128], index: 1, kind: output, shape index: {}]  }
   0x1   :  { %7 = vsyncpa [#allocation4], 0  ;;  %s91_s6 = smov [#allocation2]   ;;  %s43_s10 = scalar_lea.hbm %s128_s0, 128 }
   0x2   :  { %s14_s7 = sshll.u32 %s91_s6, 4  ;;  %p44_p0 = scmp.ne.s32.totalorder %s128_s0, %s43_s10  ;;  %s15_s7 = int_to_ptr.vmem [resolvable:$true] %s14_s7 }
   0x3   :  { %p47_p1 = scmp.lt.u32.totalorder %s43_s10, %s128_s0 }
   0x5   :  { %p49_p2 = pnand %p47_p1, %p44_p0 }
   0x7   :  { %52 = shalt.err (!%p49_p2)
}
   0x8   :  { %s53_s15 = scalar_lea.vmem %s15_s7, 128  ;;  %p58_p4 = scmp.lt.s32.totalorder %s15_s7, %s15_s7 }
   0x9   :  { %p54_p3 = scmp.ne.s32.totalorder %s15_s7, %s53_s15  ;;  %p59_p5 = scmp.lt.s32.totalorder %s53_s15, %s53_s15 }
   0xb   :  { %p60_p6 = por %p59_p5, %p58_p4 }
   0xd   :  { %p61_p7 = pnand %p60_p6, %p54_p3 }
   0xf   :  { %64 = shalt.err (!%p61_p7)
}
  0x10   :  { %17 = dma.hbm_to_vmem [thread:$0]  %s128_s0, 128, %s15_s7, [#allocation3]  }
  0x11   :  { %87 = dma.done.wait [#allocation3], 128  }
  0x12   :  { %88 = vsyncadd [#allocation3], 4294967168  ;;  %v21_v0 = vld [vmem:[#allocation2] sm:$0xff]  ;;  %s92_s18 = smov 1   ;;  %s93_s19 = smov [#allocation5]  }
  0x13   :  { %22 = vrot.lane.b32.xlu0 %v21_v0, %s92_s18  ;;  %s31_s20 = sshll.u32 %s93_s19, 4  ;;  %s32_s20 = int_to_ptr.vmem [resolvable:$true] %s31_s20 }
  0x14   :  { %s65_s21 = scalar_lea.vmem %s32_s20, 128  ;;  %p70_p9 = scmp.lt.s32.totalorder %s32_s20, %s32_s20 }
  0x15   :  { %p66_p8 = scmp.ne.s32.totalorder %s32_s20, %s65_s21  ;;  %p71_p10 = scmp.lt.s32.totalorder %s65_s21, %s65_s21 }
  0x17   :  { %p72_p11 = por %p71_p10, %p70_p9 }
  0x19   :  { %p73_p12 = pnand %p72_p11, %p66_p8 }
  0x85   :  { %v23_v1 = vpop.permute.xlu0 %22 }
  0x86   :  { %24 = vst [vmem:[#allocation5] sm:$0xff] %v23_v1 }
  0x87   :  { %76 = shalt.err (!%p73_p12)
}
  0x88   :  { %s77_s0 = scalar_lea.hbm %s129_s1, 128 }
  0x89   :  { %p78_p13 = scmp.ne.s32.totalorder %s129_s1, %s77_s0  ;;  %p81_p0 = scmp.lt.u32.totalorder %s77_s0, %s129_s1 }
  0x8b   :  { %p83_p1 = pnand %p81_p0, %p78_p13 }
  0x8d   :  { %86 = shalt.err (!%p83_p1)
}
  0x8e   :  { %34 = dma.vmem_to_hbm [thread:$0]  %s32_s20, 128, %s129_s1, [#allocation4]  }
  0x8f   :  { %89 = dma.done.wait [#allocation4], 128  }
  0x90   :  { %90 = vsyncadd [#allocation4], 4294967168 }
  0x91   :  { %38 = vsyncpa [#allocation3], 1 }
  0x92   :  { %39 = vsyncpa [#allocation4], 1 }

</bundles_post_ra>
